<compile_context>
chip_gen: v7x
topology: tpu7x:2x2x1
jax: 0.10.0
libtpu: 0.0.40
codegen_flags: <defaults>
</compile_context>

<pallas_src>
import jax
import jax.numpy as jnp
from jax.experimental import pallas as pl
from jax.experimental.pallas import tpu as pltpu


def _scoped_vmem_budget_bytes():
    """Scoped-VMEM budget we are willing to request on this TPU generation."""
    phys = 64 << 20  # conservative default (v7x per-TensorCore VMEM)
    try:
        phys = int(pltpu.get_tpu_info().vmem_capacity_bytes)
    except Exception:
        pass
    # Leave headroom for compiler-internal scratch / pipeline bookkeeping.
    return min(phys * 3 // 4, 96 << 20)


def _pick_channel_tile(c_in, hw, itemsize, per_buffer_budget):
    """Largest channel tile dividing c_in whose (tc, HW) input block fits one
    double-buffer slot. When tiling (tc < c_in), tc must be a multiple of 8 so the
    (1, tc, HW) block satisfies the sublane tiling rule."""
    if c_in * hw * itemsize <= per_buffer_budget:
        return c_in
    divs = [d for d in range(8, c_in, 8) if c_in % d == 0]
    fitting = [d for d in divs if d * hw * itemsize <= per_buffer_budget]
    if fitting:
        return max(fitting)
    # Fallback: smallest legal tile (may exceed the nominal budget; vmem_limit_bytes
    # below is raised from the actually-chosen block sizes).
    return min(divs) if divs else c_in


def aspp_pool(x, weight, bn_gamma, bn_beta, bn_mean, bn_var, eps=1e-5,
              *, channel_tile=None, core_splits=None):
    """x: (B, C_in, H, W); weight: (C_out, C_in) (1x1 conv weight, squeezed), no bias."""
    b, c_in, h, w = x.shape
    c_out = weight.shape[0]
    hw = h * w
    itemsize = x.dtype.itemsize

    # Lane-dense layouts: flatten the spatial dims outside the kernel.
    x_flat = x.reshape(b, c_in, hw)
    w_t = jnp.transpose(weight.reshape(c_out, c_in)).astype(jnp.float32)  # (C_in, C_out)

    # ---- generation-aware VMEM budgeting (accounts for 2x double buffering) ----
    budget = _scoped_vmem_budget_bytes()
    out_pad = 8 * max(c_out, 128) * 4                  # one padded (1,1,1,C_out) buffer
    fixed = (2 * c_in * c_out * 4                      # resident f32 weight (2 buffers)
             + 3 * out_pad                             # output double-buffers + accumulator
             + (2 << 20))                              # compiler-internal margin
    per_buffer = max((budget - fixed) // 2, 1 << 20)

    if channel_tile is None:
        tc = _pick_channel_tile(c_in, hw, itemsize, per_buffer)
    else:
        tc = int(channel_tile)
        assert c_in % tc == 0 and (tc == c_in or tc % 8 == 0)

    n_blocks = c_in // tc
    if core_splits is None:
        # Split the C_in reduction across TensorCores only when the batch axis cannot
        # occupy them (v7x has 2 TCs per chip); harmless (same work) on 1-TC chips.
        n_split = 2 if (b == 1 and n_blocks >= 2 and n_blocks % 2 == 0) else 1
    else:
        n_split = int(core_splits)
        assert n_blocks % n_split == 0
    n_k = n_blocks // n_split

    needed = 2 * tc * hw * itemsize + fixed + (6 << 20)
    vmem_limit = int(max(min(needed, budget), 32 << 20))

    def kernel(x_ref, w_ref, o_ref, acc_ref):
        # x_ref:   (1, tc, HW)      channel slice of the input (native dtype)
        # w_ref:   (C_in, C_out)    full 1x1-conv weight, resident in VMEM (f32)
        # o_ref:   (1, 1, 1, C_out) un-broadcast partial output row (f32)
        # acc_ref: (1, C_out)       f32 accumulator (conv of the partial spatial sum)
        s = pl.program_id(0)
        k = pl.program_id(2)

        @pl.when(k == 0)
        def _():
            acc_ref[...] = jnp.zeros_like(acc_ref)

        # Partial spatial sum of this channel slice (f32 accumulation).
        xb = x_ref[0].astype(jnp.float32)                     # (tc, HW)
        col = jnp.sum(xb, axis=-1, keepdims=True)             # (tc, 1)

        # Matching channel slice of the resident weight.
        if n_blocks == 1:
            w_slice = w_ref[...]                              # (C_in, C_out)
        else:
            start = pl.multiple_of((s * n_k + k) * tc, tc)    # 8-aligned sublane slice
            w_slice = w_ref[pl.ds(start, tc), :]              # (tc, C_out)

        # (tc, 1) * (tc, C_out) summed over channels -> lane-dense (1, C_out) row.
        # Compute sits far under the HBM-DMA roofline, so VPU/XLU is plenty here.
        acc_ref[...] += jnp.sum(col * w_slice, axis=0, keepdims=True)

        @pl.when(k == pl.num_programs(2) - 1)
        def _():
            o_ref[...] = acc_ref[...].reshape(1, 1, 1, c_out).astype(o_ref.dtype)

    partials = pl.pallas_call(
        kernel,
        out_shape=jax.ShapeDtypeStruct((n_split, b, 1, c_out), jnp.float32),
        grid_spec=pltpu.PrefetchScalarGridSpec(
            num_scalar_prefetch=0,
            grid=(n_split, b, n_k),
            in_specs=[
                pl.BlockSpec((1, tc, hw), lambda s, i, k: (i, s * n_k + k, 0)),
                # Constant index map -> fetched once and kept resident in VMEM.
                pl.BlockSpec((c_in, c_out), lambda s, i, k: (0, 0)),
            ],
            out_specs=pl.BlockSpec((1, 1, 1, c_out), lambda s, i, k: (s, i, 0, 0)),
            scratch_shapes=[pltpu.VMEM((1, c_out), jnp.float32)],
        ),
        compiler_params=pltpu.CompilerParams(
            dimension_semantics=("parallel", "parallel", "arbitrary"),
            vmem_limit_bytes=vmem_limit),
    )(x_flat, w_t)

    # Tiny epilogue (fuses in XLA): combine core-split partials, fold the 1/(H*W)
    # pooling factor + eval-mode BN into scale/shift, ReLU, then the 1x1-source
    # bilinear "upsample" is just a lazy constant broadcast back to (H, W).
    s_bn = bn_gamma.astype(jnp.float32) / jnp.sqrt(bn_var.astype(jnp.float32) + eps)
    scale = s_bn / float(hw)
    shift = bn_beta.astype(jnp.float32) - bn_mean.astype(jnp.float32) * s_bn

    y = jnp.sum(partials[:, :, 0, :], axis=0)                 # (B, C_out)
    y = jnp.maximum(y * scale + shift, 0.0).astype(x.dtype)
    return jnp.broadcast_to(y[:, :, None, None], (b, c_out, h, w))


def _reference(x, weight, bn_gamma, bn_beta, bn_mean, bn_var, eps=1e-5):
    pooled = jnp.mean(x.astype(jnp.float32), axis=(2, 3))     # (B, C_in)
    y = pooled @ weight.astype(jnp.float32).T                 # (B, C_out)
    y = (y - bn_mean) / jnp.sqrt(bn_var + eps) * bn_gamma + bn_beta
    y = jnp.maximum(y, 0.0)
    b, _, h, w = x.shape
    return jnp.broadcast_to(y[:, :, None, None], (b, y.shape[1], h, w))


def _make_params(key, c_in, c_out):
    weight = 0.1 * jax.random.normal(key, (c_out, c_in), dtype=jnp.float32)  # 1x1 conv, no bias
    bn_gamma = 1.0 + 0.1 * jnp.arange(c_out, dtype=jnp.float32)
    bn_beta = 0.01 * jnp.arange(c_out, dtype=jnp.float32)
    bn_mean = 0.05 * jnp.arange(c_out, dtype=jnp.float32)
    bn_var = 1.0 + 0.02 * jnp.arange(c_out, dtype=jnp.float32)
    return weight, bn_gamma, bn_beta, bn_mean, bn_var


if __name__ == "__main__":
    key = jax.random.PRNGKey(0)
    kx1, kw1, kx2, kw2 = jax.random.split(key, 4)

    # Test 1: default path (no channel tiling, no core split).
    B, C_IN, C_OUT, H, W = 2, 4, 8, 16, 16
    x1 = jax.random.normal(kx1, (B, C_IN, H, W), dtype=jnp.float32)
    p1 = _make_params(kw1, C_IN, C_OUT)
    out1 = jax.block_until_ready(aspp_pool(x1, *p1))
    ref1 = _reference(x1, *p1)
    assert out1.shape == (B, C_OUT, H, W)
    assert jnp.allclose(out1, ref1, atol=1e-5, rtol=1e-5)

    # Test 2: exercise the channel-tiled reduction + megacore split path (B == 1).
    B2, C_IN2, C_OUT2, H2, W2 = 1, 16, 8, 8, 8
    x2 = jax.random.normal(kx2, (B2, C_IN2, H2, W2), dtype=jnp.float32)
    p2 = _make_params(kw2, C_IN2, C_OUT2)
    out2 = jax.block_until_ready(aspp_pool(x2, *p2, channel_tile=8))
    ref2 = _reference(x2, *p2)
    assert out2.shape == (B2, C_OUT2, H2, W2)
    assert jnp.allclose(out2, ref2, atol=1e-5, rtol=1e-5)

    print("KERNEL_OK")
</pallas_src>

<mosaic_0001>
module attributes {stable_mosaic.version = 11 : i64} {
  func.func @kernel(%arg0: i32, %arg1: i32, %arg2: i32, %arg3: memref<1x4x256xf32, #tpu.memory_space<vmem>>, %arg4: memref<4x8xf32, #tpu.memory_space<vmem>>, %arg5: memref<1x1x1x8xf32, #tpu.memory_space<vmem>>, %arg6: memref<1x8xf32, #tpu.memory_space<vmem>>) attributes {dimension_semantics = [#tpu.dimension_semantics<parallel>, #tpu.dimension_semantics<parallel>, #tpu.dimension_semantics<arbitrary>], iteration_bounds = array<i64: 1, 2, 1>, scalar_prefetch = 0 : i64, scratch_operands = 1 : i64, tpu.core_type = #tpu.core_type<tc>, window_params = [{transform_indices = @transform_0, window_bounds = array<i64: 1, 4, 256>}, {pipeline_mode = #tpu.pipeline_mode<synchronous>, transform_indices = @transform_1, window_bounds = array<i64: 4, 8>}, {transform_indices = @transform_2, window_bounds = array<i64: 1, 1, 1, 8>}]} {
    %c0_i32 = arith.constant 0 : i32
    %0 = arith.cmpi eq, %arg2, %c0_i32 : i32
    %1 = arith.extui %0 : i1 to i32
    %c0_i32_0 = arith.constant 0 : i32
    %2 = arith.cmpi ne, %1, %c0_i32_0 : i32
    scf.if %2 {
      %cst_12 = arith.constant 0.000000e+00 : f32
      %18 = vector.broadcast %cst_12 : f32 to vector<1x8xf32>
      %c0_13 = arith.constant 0 : index
      %c0_14 = arith.constant 0 : index
      %19 = vector.load %arg6[%c0_13, %c0_14] : memref<1x8xf32, #tpu.memory_space<vmem>>, vector<1x8xf32>
      tpu.vector_store %arg6[%c0_13, %c0_14], %18 {strides = array<i32>} : memref<1x8xf32, #tpu.memory_space<vmem>>, vector<1x8xf32>,
    } else {
    }
    %c0 = arith.constant 0 : index
    %c0_1 = arith.constant 0 : index
    %c0_2 = arith.constant 0 : index
    %3 = vector.load %arg3[%c0, %c0_1, %c0_2] : memref<1x4x256xf32, #tpu.memory_space<vmem>>, vector<1x4x256xf32>
    %4 = vector.shape_cast %3 : vector<1x4x256xf32> to vector<4x256xf32>
    %cst = arith.constant dense<0.000000e+00> : vector<4xf32>
    %5 = vector.multi_reduction <add>, %4, %cst [1] : vector<4x256xf32> to vector<4xf32>
    %6 = vector.shape_cast %5 : vector<4xf32> to vector<4x1xf32>
    %c0_3 = arith.constant 0 : index
    %c0_4 = arith.constant 0 : index
    %7 = vector.load %arg4[%c0_3, %c0_4] : memref<4x8xf32, #tpu.memory_space<vmem>>, vector<4x8xf32>
    %c0_5 = arith.constant 0 : index
    %c0_6 = arith.constant 0 : index
    %8 = vector.load %arg6[%c0_5, %c0_6] : memref<1x8xf32, #tpu.memory_space<vmem>>, vector<1x8xf32>
    %9 = vector.broadcast %6 : vector<4x1xf32> to vector<4x8xf32>
    %10 = arith.mulf %9, %7 : vector<4x8xf32>
    %cst_7 = arith.constant dense<0.000000e+00> : vector<8xf32>
    %11 = vector.multi_reduction <add>, %10, %cst_7 [0] : vector<4x8xf32> to vector<8xf32>
    %12 = vector.shape_cast %11 : vector<8xf32> to vector<1x8xf32>
    %13 = arith.addf %8, %12 : vector<1x8xf32>
    %c0_8 = arith.constant 0 : index
    %c0_9 = arith.constant 0 : index
    %14 = vector.load %arg6[%c0_8, %c0_9] : memref<1x8xf32, #tpu.memory_space<vmem>>, vector<1x8xf32>
    tpu.vector_store %arg6[%c0_8, %c0_9], %13 {strides = array<i32>} : memref<1x8xf32, #tpu.memory_space<vmem>>, vector<1x8xf32>,
    %c0_i32_10 = arith.constant 0 : i32
    %15 = arith.cmpi eq, %arg2, %c0_i32_10 : i32
    %16 = arith.extui %15 : i1 to i32
    %c0_i32_11 = arith.constant 0 : i32
    %17 = arith.cmpi ne, %16, %c0_i32_11 : i32
    scf.if %17 {
      %c0_12 = arith.constant 0 : index
      %c0_13 = arith.constant 0 : index
      %18 = vector.load %arg6[%c0_12, %c0_13] : memref<1x8xf32, #tpu.memory_space<vmem>>, vector<1x8xf32>
      %19 = vector.shape_cast %18 : vector<1x8xf32> to vector<1x1x1x8xf32>
      %c0_14 = arith.constant 0 : index
      %c0_15 = arith.constant 0 : index
      %c0_16 = arith.constant 0 : index
      %c0_17 = arith.constant 0 : index
      %20 = vector.load %arg5[%c0_14, %c0_15, %c0_16, %c0_17] : memref<1x1x1x8xf32, #tpu.memory_space<vmem>>, vector<1x1x1x8xf32>
      tpu.vector_store %arg5[%c0_14, %c0_15, %c0_16, %c0_17], %19 {strides = array<i32>} : memref<1x1x1x8xf32, #tpu.memory_space<vmem>>, vector<1x1x1x8xf32>,
    } else {
    }
    return
  }
  func.func @transform_0(%arg0: i32, %arg1: i32, %arg2: i32) -> (i32, i32, i32) {
    %c1_i32 = arith.constant 1 : i32
    %0 = arith.muli %arg0, %c1_i32 : i32
    %1 = arith.addi %0, %arg2 : i32
    %c0_i32 = arith.constant 0 : i32
    %c0_i32_0 = arith.constant 0 : i32
    return %arg1, %1, %c0_i32 : i32, i32, i32
  }
  func.func @transform_1(%arg0: i32, %arg1: i32, %arg2: i32) -> (i32, i32) {
    %c0_i32 = arith.constant 0 : i32
    %c0_i32_0 = arith.constant 0 : i32
    %c0_i32_1 = arith.constant 0 : i32
    return %c0_i32, %c0_i32_0 : i32, i32
  }
  func.func @transform_2(%arg0: i32, %arg1: i32, %arg2: i32) -> (i32, i32, i32, i32) {
    %c0_i32 = arith.constant 0 : i32
    %c0_i32_0 = arith.constant 0 : i32
    %c0_i32_1 = arith.constant 0 : i32
    return %arg0, %arg1, %c0_i32, %c0_i32_0 : i32, i32, i32, i32
  }
}

</mosaic_0001>

<bundles_post_ra>
// kernel: tpu_custom_call.1
= control target key start
LH: loop header
LB: loop body
LE: loop exit
PB: predicated region body
PF: predicated region fallthrough
CT: control target
= control target key end

     0   :  { %7 = vsyncpa [#allocation4], 0  ;;  %s819_s0 = inlined_call_operand.hbm [shape: f32[2,4,256], index: 0, kind: input, shape index: {}]   ;;  %s820_s1 = inlined_call_operand.hbm [shape: f32[4,8], index: 1, kind: input, shape index: {}]   ;;  %s821_s2 = inlined_call_operand.hbm [shape: f32[1,2,1,8], index: 2, kind: output, shape index: {}]  }
   0x1   :  { %9 = vsyncpa [#allocation4 + $0x1], 0 }
   0x2   :  { %10 = vsyncpa [#allocation7], 0 }
   0x3   :  { %11 = vsyncpa [#allocation5], 0 }
   0x4   :  { %13 = vsyncpa [#allocation5 + $0x1], 0  ;;  %s599_s9 = smov 0   ;;  %s601_s10 = smov 0  }
   0x5   :  { %s603_s11 = smov 0   ;;  %s605_s12 = smov 0  }
   0x6   :  { %s607_s13 = smov 0   ;;  %s609_s14 = smov 0  }
   0x7 LB: > { %s344_s15 = sadd.s32 4294967295, %s578_s14   ;;  %s345_s16 = sadd.s32 4294967294, %s578_s14   ;;  %s578_s14 = sphi %s609_s14, %s19_s14   ;;  %s574_s13 = sphi %s607_s13, %s846_s13   ;;  %s570_s12 = sphi %s605_s12, %s845_s12   ;;  %s566_s11 = sphi %s603_s11, %s844_s11   ;;  %s562_s10 = sphi %s601_s10, %s843_s10   ;;  %s558_s9 = sphi %s599_s9, %s842_s9  }
   0x8   : > { %p62_p0 = scmp.ne.s32.totalorder %s562_s10, %s558_s9  ;;  %p633_p1 = scmp.eq.s32.totalorder %s344_s15, 0 }
   0x9   : > { %p637_p2 = scmp.eq.s32.totalorder %s344_s15, 1  ;;  %p115_p3 = scmp.eq.s32.totalorder %s345_s16, 1 }
   0xa   : > { %s826_s17 = scalar_select %p633_p1, 1, 0 }
   0xb   : > { %s827_s18 = scalar_select %p637_p2, 1, 0 }
   0xc   : > { %p643_p4 = por %p633_p1, %p62_p0  ;;  %p346_p5 = scmp.ge.s32.totalorder %s578_s14, 1 }
   0xd   : > { %p648_p6 = por %p115_p3, %p62_p0  ;;  %p122_p7 = scmp.lt.s32.totalorder %s578_s14, 3 }
   0xe   : > { %s828_s19 = scalar_select %p643_p4, 1, 0 }
   0xf   : > { %s829_s20 = scalar_select %p648_p6, 1, 0 }
  0x10   : > { %p653_p8 = pnand %p346_p5, %p122_p7  ;;  %s580_s22 = smov [#allocation6]  }
  0x11   : > { %s135_s23 = sshll.u32 %s580_s22, 4  ;;  %s34_s25 = sadd.s32 1, %s574_s13  ;;  %s136_s23 = int_to_ptr.vmem [resolvable:$true] %s135_s23 }
  0x12   : > { %s830_s21 = scalar_select %p653_p8, 1, 0 }
  0x13   : > { %p367_p10 = pneg %p653_p8  ;;  %s49_s26 = sadd.s32 1, %s566_s11 }
  0x14   : > { %p668_p12 = scmp.ge.s32.totalorder %s34_s25, 2  ;;  %s434_s30 = scalar_lea.hbm %s820_s1, 64 }
  0x15   : > { %p662_p11 = pnand %p367_p10, %p633_p1  ;;  %p435_p13 = scmp.ne.s32.totalorder %s820_s1, %s434_s30 }
  0x16   : > { %s832_s27 = scalar_select %p668_p12, 1, 0 }
  0x17   : > { %p436_p0 = pneg %p662_p11  ;;  %p441_p7 = scmp.lt.u32.totalorder %s434_s30, %s820_s1 }
  0x19   : > { %p437_p3 = pnand %p436_p0, %p435_p13 }
  0x1b   : > { %p438_p5 = pneg %p437_p3 }
  0x1d   : > { %p443_p10 = pnand %p441_p7, %p438_p5 }
  0x1f   : > { %446 = shalt.err (!%p443_p10)
}
  0x20   : > { %s447_s7 = scalar_lea.vmem %s136_s23, 64  ;;  %p455_p4 = scmp.lt.s32.totalorder %s136_s23, %s136_s23 }
  0x21   : > { %p448_p9 = scmp.ne.s32.totalorder %s136_s23, %s447_s7  ;;  %p456_p8 = scmp.lt.s32.totalorder %s447_s7, %s447_s7 }
  0x23   : > { %p450_p6 = pnand %p448_p9, %p436_p0  ;;  %p457_p2 = por %p456_p8, %p455_p4 }
  0x25   : > { %p451_p1 = pneg %p450_p6 }
  0x27   : > { %p458_p12 = pnand %p457_p2, %p451_p1 }
  0x29   : > { %461 = shalt.err (!%p458_p12)
}
  0x2a   : > { %370 = dma.hbm_to_vmem [thread:$0]  (!%p662_p11), %s820_s1, 64, %s136_s23, [#allocation7]  }
  0x2b   : > { %p833_p4 = scmp.ne.s32.totalorder %s832_s27, 0  ;;  %p56_p1 = scmp.ne.s32.totalorder %s566_s11, %s562_s10 }
  0x2c   : > { %p57_p2 = scmp.eq.s32.totalorder %s578_s14, 0  ;;  %p380_p6 = scmp.lt.s32.totalorder %s578_s14, 2 }
  0x2d   : > { %s848_s25 = smov (%p833_p4, %s34_s25), 0  ;;  %p834_p12 = scmp.ne.s32.totalorder %s827_s18, 0 }
  0x2e   : > { %s44_s16 = ssub.s32 %s574_s13, %s848_s25  ;;  %p58_p9 = por %p57_p2, %p56_p1 }
  0x2f   : > { %p47_p8 = scmp.eq.s32.totalorder %s44_s16, 0  ;;  %p700_p13 = por %p834_p12, %p56_p1 }
  0x30   : > { %s146_s24 = sand.u32 1, %s566_s11   ;;  %s358_s27 = sshll.u32 %s574_s13, 7 }
  0x31   : > { %s708_s28 = scalar_select %p47_p8, %s566_s11, %s49_s26  }
  0x32   : > { %s349_s23 = sshll.u32 %s146_s24, 3  ;;  %s714_s3 = scalar_lea.hbm %s819_s0, %s358_s27 }
  0x33   : > { %s150_s18 = scalar_lea.vmem [#allocation3], %s349_s23  ;;  %p718_p11 = pnand %p380_p6, %p58_p9 }
  0x34   : > { %s161_s4 = sshll.u32 %s150_s18, 4  ;;  %s147_s26 = scalar_lea.sflag [#allocation4], %s146_s24  ;;  %s716_s4 = int_to_ptr.vmem [resolvable:$true] %s161_s4 }
  0x35   : > { %s462_s6 = scalar_lea.hbm %s714_s3, 128  ;;  %p464_p3 = pneg %p718_p11 }
  0x36   : > { %p463_p0 = scmp.ne.s32.totalorder %s714_s3, %s462_s6  ;;  %s467_s15 = scalar_lea.hbm %s819_s0, 256 }
  0x37   : > { %p468_p10 = scmp.lt.u32.totalorder %s714_s3, %s819_s0  ;;  %p469_p4 = scmp.lt.u32.totalorder %s467_s15, %s462_s6 }
  0x38   : > { %p465_p5 = pnand %p464_p3, %p463_p0  ;;  %p471_p2 = scmp.lt.u32.totalorder %s462_s6, %s714_s3 }
  0x39   : > { %p470_p1 = por %p469_p4, %p468_p10 }
  0x3a   : > { %p466_p7 = pneg %p465_p5 }
  0x3b   : > { %p472_p6 = por %p471_p2, %p470_p1 }
  0x3d   : > { %p473_p8 = pnand %p472_p6, %p466_p7 }
  0x3f   : > { %476 = shalt.err (!%p473_p8)
}
  0x40   : > { %s477_s24 = scalar_lea.vmem %s716_s4, 128  ;;  %s581_s27 = smov [#allocation3]  }
  0x41   : > { %p478_p9 = scmp.ne.s32.totalorder %s716_s4, %s477_s24  ;;  %s482_s29 = sshll.u32 %s581_s27, 4  ;;  %s483_s29 = int_to_ptr.vmem [resolvable:$false] %s482_s29 }
  0x42   : > { %s484_s30 = scalar_lea.vmem %s483_s29, 256  ;;  %p485_p5 = scmp.lt.s32.totalorder %s716_s4, %s483_s29 }
  0x43   : > { %p480_p12 = pnand %p478_p9, %p464_p3  ;;  %p486_p10 = scmp.lt.s32.totalorder %s484_s30, %s477_s24 }
  0x45   : > { %p481_p0 = pneg %p480_p12  ;;  %p487_p4 = por %p486_p10, %p485_p5 }
  0x47   : > { %p488_p1 = pnand %p487_p4, %p481_p0 }
  0x49   : > { %491 = shalt.err (!%p488_p1)
}
  0x4a   : > { %374 = dma.hbm_to_vmem [thread:$0]  (!%p718_p11), %s714_s3, 128, %s716_s4, %s147_s26  }
  0x4b   : > { %p837_p7 = scmp.ne.s32.totalorder %s830_s21, 0 }
  0x4c   : > { %s750_s18 = sand.u32 (!%p837_p7), 1, %s562_s10   ;;  %p838_p3 = scmp.ne.s32.totalorder (!%p837_p7), %s828_s19, 0 }
  0x4d   : > { %170 = sbr.rel (%p837_p7) target bundleno = 275 (0x113), region = 28  ;;  %s353_s6 = sshll.u32 (!%p837_p7), %s750_s18, 3 }
  0x4e   : > { %s173_s7 = scalar_lea.sflag (!%p837_p7), [#allocation4], %s750_s18  ;;  %s176_s8 = scalar_lea.vmem (!%p837_p7), [#allocation3], %s353_s6 }
  0x54   : > { %545 = dma.done.wait (%p838_p3), %s173_s7, 128  }
  0x55   : > { %547 = vsyncadd (%p838_p3), %s173_s7, 4294967168  ;;  %p839_p2 = scmp.ne.s32.totalorder %s826_s17, 0 }
  0x57   : > { %549 = dma.done.wait (%p839_p2), [#allocation7], 64  }
  0x58   : > { %551 = vsyncadd (%p839_p2), [#allocation7], 4294967232  ;;  %vm205_vm0 = vcmask 57344   ;;  %v582_v0 = vmov 0.0   ;;  %vm211_vm1 = vcmask 1043456   ;;  %v207_v1 = vld [vmem:[%s176_s8] sm:$0xff] }
  0x59   : > { %206 = vst.msk [vmem:[#allocation2] sm:$0x1] %vm205_vm0, %v582_v0  ;;  %v209_v2 = vcombine.high %v207_v1, %v207_v1  ;;  %v212_v3 = vsel %vm211_vm1, %v207_v1, 0.0  ;;  %v217_v6 = vld [vmem:[#allocation6] sm:$0xf]  ;;  %vm220_vm2 = vcmask 60416  }
  0x5a   : > { %s355_s17 = sshll.u32 %s570_s12, 4  ;;  %s199_s19 = scalar_lea.vmem [#allocation8], %s750_s18 }
  0x5b   : > { %v213_v4 = vsel %vm211_vm1, %v209_v2, 0.0  ;;  %s251_s21 = sshll.u32 %s199_s19, 4  ;;  %s769_s5 = scalar_lea.hbm %s821_s2, %s355_s17  ;;  %s771_s21 = int_to_ptr.vmem [resolvable:$true] %s251_s21 }
  0x5c   : > { %v214_v5 = vadd.f32 %v213_v4, %v212_v3  ;;  %s237_s26 = scalar_lea.sflag [#allocation5], %s750_s18  ;;  %s492_s15 = scalar_lea.vmem %s771_s21, 16 }
  0x5d   : > { %p493_p11 = scmp.ne.s32.totalorder %s771_s21, %s492_s15  ;;  %s583_s12 = smov [#allocation8]  }
  0x5e   : > { %215 = vadd.xlane.f32.xlu0 %v214_v5  ;;  %s496_s16 = sshll.u32 %s583_s12, 4  ;;  %s497_s16 = int_to_ptr.vmem [resolvable:$false] %s496_s16 }
  0x5f   : > { %p494_p6 = pnand %p493_p11, %p700_p13  ;;  %s498_s23 = scalar_lea.vmem %s497_s16, 32 }
  0x60   : > { %v218_v15 = vld [vmem:[#allocation2] sm:$0x1]  ;;  %p499_p9 = scmp.lt.s32.totalorder %s771_s21, %s497_s16  ;;  %p500_p12 = scmp.lt.s32.totalorder %s498_s23, %s492_s15 }
  0x61   : > { %p495_p8 = pneg %p494_p6 }
  0x62   : > { %p501_p0 = por %p500_p12, %p499_p9 }
  0x64   : > { %p502_p5 = pnand %p501_p0, %p495_p8 }
  0xeb   : > { %v216_v7 = vpop.xlane.xlu0 %215 }
  0xec   : > { %v219_v8 = vmul.f32 %v217_v6, %v216_v7 }
  0xee   : > { %v221_v9 = vsel %vm220_vm2, %v219_v8, 0.0 }
  0xef   : > { %v222_v10 = vrot.slane %v221_v9, 4 }
  0xf1   : > { %v223_v11 = vadd.f32 %v222_v10, %v221_v9 }
  0xf3   : > { %v224_v12 = vrot.slane %v223_v11, 2 }
  0xf5   : > { %v225_v13 = vadd.f32 %v224_v12, %v223_v11 }
  0xf7   : > { %v226_v14 = vrot.slane %v225_v13, 1 }
  0xf9   : > { %v227_v16 = vadd.f32 %v226_v14, %v225_v13 }
  0xfb   : > { %v228_v17 = vadd.f32 %v227_v16, %v218_v15 }
  0xfd   : > { %230 = vst.msk [vmem:[#allocation2] sm:$0x1] %vm205_vm0, %v228_v17 }
 0x104   : > { %v234_v18 = vld [vmem:[#allocation2] sm:$0x1] }
 0x105   : > { %235 = vst.msk [vmem:[%s199_s19] sm:$0x1] %vm205_vm0, %v234_v18 }
 0x106   : > { %505 = shalt.err (!%p502_p5)
}
 0x107   : > { %s506_s24 = scalar_lea.hbm %s769_s5, 16  ;;  %s510_s30 = scalar_lea.hbm %s821_s2, 32 }
 0x108   : > { %p507_p10 = scmp.ne.s32.totalorder %s769_s5, %s506_s24  ;;  %p511_p7 = scmp.lt.u32.totalorder %s769_s5, %s821_s2 }
 0x109   : > { %p512_p3 = scmp.lt.u32.totalorder %s510_s30, %s506_s24  ;;  %p514_p11 = scmp.lt.u32.totalorder %s506_s24, %s769_s5 }
 0x10a   : > { %p508_p4 = pnand %p507_p10, %p700_p13 }
 0x10b   : > { %p513_p2 = por %p512_p3, %p511_p7 }
 0x10c   : > { %p509_p1 = pneg %p508_p4 }
 0x10d   : > { %p515_p6 = por %p514_p11, %p513_p2 }
 0x10f   : > { %p516_p8 = pnand %p515_p6, %p509_p1 }
 0x111   : > { %519 = shalt.err (!%p516_p8)
}
 0x112   : > { %365 = dma.vmem_to_hbm [thread:$0]  (%p700_p13), %s771_s21, 16, %s769_s5, %s237_s26  }
 0x113 PF: > { %s263_s7 = sand.u32 1, %s558_s9   ;;  %p840_p9 = scmp.ne.s32.totalorder %s829_s20, 0 }
 0x114   : > { %p841_p12 = scmp.ge.s32.totalorder %s578_s14, 2  ;;  %s264_s8 = scalar_lea.sflag [#allocation5], %s263_s7 }
 0x116   : > { %p376_p0 = pnand %p841_p12, %p840_p9 }
 0x118   : > { %553 = dma.done.wait (!%p376_p0), %s264_s8, 16  }
 0x119   : > { %555 = vsyncadd (!%p376_p0), %s264_s8, 4294967280  ;;  %s19_s14 = sadd.s32 1, %s578_s14   ;;  %s842_s9 = smov %s562_s10 }
 0x11a   : > { %p16_p5 = scmp.ge.s32.totalorder %s19_s14, 4   ;;  %s843_s10 = smov %s566_s11 }
 0x11b   : > { %s844_s11 = smov %s708_s28  ;;  %s845_s12 = smov %s574_s13 }
 0x11c   : > { %s846_s13 = smov %s848_s25  ;;  %18 = sbr.rel (!%p16_p5) target bundleno = 7 (0x7), region = 85 }
 0x123   :  { %268 = vsyncpa [#allocation4], 1 }
 0x124   :  { %270 = vsyncpa [#allocation4 + $0x1], 1 }
 0x125   :  { %271 = vsyncpa [#allocation7], 1 }
 0x126   :  { %272 = vsyncpa [#allocation5], 1 }
 0x127   :  { %274 = vsyncpa [#allocation5 + $0x1], 1 }

</bundles_post_ra>
